<compile_context>
chip_gen: v7x
topology: tpu7x:2x2x1
jax: 0.10.0
libtpu: 0.0.40
codegen_flags: <defaults>
</compile_context>

<pallas_src>
import functools

import jax
import jax.numpy as jnp
from jax.experimental import pallas as pl
from jax.experimental.pallas import tpu as pltpu


def _contrastive_loss_kernel(o1_ref, o2_ref, t_ref, loss_ref, *,
                             margin, eps, batch_tile):
    i = pl.program_id(0)

    # Native-dtype tiles DMA'd by BlockSpec; upcast to f32 for the math.
    o1 = o1_ref[...].astype(jnp.float32)                   # (tb, D)
    o2 = o2_ref[...].astype(jnp.float32)                   # (tb, D)

    diff = o2 - o1
    dist = jnp.sum(diff * diff, axis=1, keepdims=True)     # (tb, 1)

    # Grid-invariant target: whole (B, 1) array lives in VMEM; slice our rows.
    start = pl.multiple_of(i * batch_tile, 8)
    tgt = t_ref[pl.ds(start, batch_tile), :]               # (tb, 1) float32

    hinge = jnp.maximum(margin - jnp.sqrt(dist + eps), 0.0)
    loss_ref[...] = 0.5 * (tgt * dist + (1.0 - tgt) * hinge * hinge)


def _pick_batch_tile(B, D, itemsize, vmem_input_budget_bytes):
    # 2 inputs x 2 pipeline buffers x (batch_tile * D * itemsize) <= budget
    cap = vmem_input_budget_bytes // (4 * D * itemsize)
    cap = max(8, (cap // 8) * 8)
    bt = min(B, cap)
    bt = max(8, (bt // 8) * 8)
    while B % bt != 0:          # keep exact tiling (B is a multiple of 8)
        bt -= 8
    return bt


def contrastive_loss(output1, output2, target, *, margin=1.0, eps=1e-9,
                     size_average=True, batch_tile=None,
                     vmem_input_budget_bytes=20 * 1024 * 1024):
    """Pallas TPU contrastive loss. output1/output2: (B, D); target: (B,)."""
    B, D = output1.shape
    assert output2.shape == (B, D)
    assert target.shape == (B,)
    assert B % 8 == 0, "B must be a multiple of 8"

    if batch_tile is None:
        itemsize = max(jnp.dtype(output1.dtype).itemsize,
                       jnp.dtype(output2.dtype).itemsize)
        batch_tile = _pick_batch_tile(B, D, itemsize, vmem_input_budget_bytes)
    assert batch_tile % 8 == 0 and B % batch_tile == 0

    t = target.astype(jnp.float32).reshape(B, 1)

    kernel = functools.partial(
        _contrastive_loss_kernel,
        margin=float(margin), eps=float(eps), batch_tile=batch_tile)

    grid = (B // batch_tile,)

    losses = pl.pallas_call(
        kernel,
        out_shape=jax.ShapeDtypeStruct((B, 1), jnp.float32),
        grid_spec=pltpu.PrefetchScalarGridSpec(
            num_scalar_prefetch=0,
            grid=grid,
            in_specs=[
                pl.BlockSpec((batch_tile, D), lambda i: (i, 0)),
                pl.BlockSpec((batch_tile, D), lambda i: (i, 0)),
                pl.BlockSpec((B, 1), lambda i: (0, 0)),   # target: resident once
            ],
            out_specs=pl.BlockSpec((batch_tile, 1), lambda i: (i, 0)),
        ),
        compiler_params=pltpu.CompilerParams(
            dimension_semantics=("parallel",),
            vmem_limit_bytes=32 * 1024 * 1024,
        ),
    )(output1, output2, t)

    per_row = losses[:, 0]
    return jnp.mean(per_row) if size_average else jnp.sum(per_row)


def _reference(output1, output2, target, margin=1.0, eps=1e-9,
               size_average=True):
    o1 = output1.astype(jnp.float32)
    o2 = output2.astype(jnp.float32)
    d = jnp.sum((o2 - o1) ** 2, axis=1)
    t = target.astype(jnp.float32)
    losses = 0.5 * (t * d + (1.0 - t) * jnp.maximum(
        margin - jnp.sqrt(d + eps), 0.0) ** 2)
    return jnp.mean(losses) if size_average else jnp.sum(losses)


if __name__ == "__main__":
    key = jax.random.PRNGKey(0)
    k1, k2, k3 = jax.random.split(key, 3)

    B, D = 16, 32
    output1 = jax.random.normal(k1, (B, D), dtype=jnp.float32)
    output2 = jax.random.normal(k2, (B, D), dtype=jnp.float32)
    target = jax.random.bernoulli(k3, 0.5, (B,)).astype(jnp.int32)

    loss_mean = contrastive_loss(output1, output2, target,
                                 margin=1.0, size_average=True)
    loss_mean = jax.block_until_ready(loss_mean)
    ref_mean = _reference(output1, output2, target, size_average=True)
    assert jnp.allclose(loss_mean, ref_mean, rtol=1e-5, atol=1e-6), \
        (loss_mean, ref_mean)

    loss_sum = contrastive_loss(output1, output2, target,
                                margin=1.0, size_average=False)
    loss_sum = jax.block_until_ready(loss_sum)
    ref_sum = _reference(output1, output2, target, size_average=False)
    assert jnp.allclose(loss_sum, ref_sum, rtol=1e-5, atol=1e-5), \
        (loss_sum, ref_sum)

    print("KERNEL_OK")
</pallas_src>

<mosaic_0001>
module attributes {stable_mosaic.version = 11 : i64} {
  func.func @_contrastive_loss_kernel(%arg0: i32, %arg1: memref<16x32xf32, #tpu.memory_space<vmem>>, %arg2: memref<16x32xf32, #tpu.memory_space<vmem>>, %arg3: memref<16x1xf32, #tpu.memory_space<vmem>>, %arg4: memref<16x1xf32, #tpu.memory_space<vmem>>) attributes {dimension_semantics = [#tpu.dimension_semantics<parallel>], iteration_bounds = array<i64: 1>, scalar_prefetch = 0 : i64, scratch_operands = 0 : i64, tpu.core_type = #tpu.core_type<tc>, window_params = [{transform_indices = @transform_0, window_bounds = array<i64: 16, 32>}, {transform_indices = @transform_1, window_bounds = array<i64: 16, 32>}, {pipeline_mode = #tpu.pipeline_mode<synchronous>, transform_indices = @transform_2, window_bounds = array<i64: 16, 1>}, {transform_indices = @transform_3, window_bounds = array<i64: 16, 1>}]} {
    %c0 = arith.constant 0 : index
    %c0_0 = arith.constant 0 : index
    %0 = vector.load %arg1[%c0, %c0_0] : memref<16x32xf32, #tpu.memory_space<vmem>>, vector<16x32xf32>
    %c0_1 = arith.constant 0 : index
    %c0_2 = arith.constant 0 : index
    %1 = vector.load %arg2[%c0_1, %c0_2] : memref<16x32xf32, #tpu.memory_space<vmem>>, vector<16x32xf32>
    %2 = arith.subf %1, %0 : vector<16x32xf32>
    %3 = arith.mulf %2, %2 : vector<16x32xf32>
    %cst = arith.constant dense<0.000000e+00> : vector<16xf32>
    %4 = vector.multi_reduction <add>, %3, %cst [1] : vector<16x32xf32> to vector<16xf32>
    %5 = vector.shape_cast %4 : vector<16xf32> to vector<16x1xf32>
    %c16_i32 = arith.constant 16 : i32
    %6 = arith.muli %arg0, %c16_i32 : i32
    %7 = tpu.assume_multiple %6, 8 : i32
    %8 = arith.index_cast %7 : i32 to index
    %c0_3 = arith.constant 0 : index
    %9 = vector.load %arg3[%8, %c0_3] : memref<16x1xf32, #tpu.memory_space<vmem>>, vector<16x1xf32>
    %cst_4 = arith.constant 9.99999971E-10 : f32
    %10 = vector.broadcast %cst_4 : f32 to vector<16x1xf32>
    %11 = arith.addf %5, %10 : vector<16x1xf32>
    %12 = math.sqrt %11 : vector<16x1xf32>
    %cst_5 = arith.constant 1.000000e+00 : f32
    %13 = vector.broadcast %cst_5 : f32 to vector<16x1xf32>
    %14 = arith.subf %13, %12 : vector<16x1xf32>
    %cst_6 = arith.constant 0.000000e+00 : f32
    %15 = vector.broadcast %cst_6 : f32 to vector<16x1xf32>
    %16 = arith.maximumf %14, %15 : vector<16x1xf32>
    %17 = arith.mulf %9, %5 : vector<16x1xf32>
    %cst_7 = arith.constant 1.000000e+00 : f32
    %18 = vector.broadcast %cst_7 : f32 to vector<16x1xf32>
    %19 = arith.subf %18, %9 : vector<16x1xf32>
    %20 = arith.mulf %19, %16 : vector<16x1xf32>
    %21 = arith.mulf %20, %16 : vector<16x1xf32>
    %22 = arith.addf %17, %21 : vector<16x1xf32>
    %cst_8 = arith.constant 5.000000e-01 : f32
    %23 = vector.broadcast %cst_8 : f32 to vector<16x1xf32>
    %24 = arith.mulf %23, %22 : vector<16x1xf32>
    %c0_9 = arith.constant 0 : index
    %c0_10 = arith.constant 0 : index
    %25 = vector.load %arg4[%c0_9, %c0_10] : memref<16x1xf32, #tpu.memory_space<vmem>>, vector<16x1xf32>
    tpu.vector_store %arg4[%c0_9, %c0_10], %24 {strides = array<i32>} : memref<16x1xf32, #tpu.memory_space<vmem>>, vector<16x1xf32>,
    return
  }
  func.func @transform_0(%arg0: i32) -> (i32, i32) {
    %c0_i32 = arith.constant 0 : i32
    %c0_i32_0 = arith.constant 0 : i32
    return %arg0, %c0_i32 : i32, i32
  }
  func.func @transform_1(%arg0: i32) -> (i32, i32) {
    %c0_i32 = arith.constant 0 : i32
    %c0_i32_0 = arith.constant 0 : i32
    return %arg0, %c0_i32 : i32, i32
  }
  func.func @transform_2(%arg0: i32) -> (i32, i32) {
    %c0_i32 = arith.constant 0 : i32
    %c0_i32_0 = arith.constant 0 : i32
    %c0_i32_1 = arith.constant 0 : i32
    return %c0_i32, %c0_i32_0 : i32, i32
  }
  func.func @transform_3(%arg0: i32) -> (i32, i32) {
    %c0_i32 = arith.constant 0 : i32
    %c0_i32_0 = arith.constant 0 : i32
    return %arg0, %c0_i32 : i32, i32
  }
}

</mosaic_0001>

<bundles_post_ra>
// kernel: tpu_custom_call.1
= control target key start
LH: loop header
LB: loop body
LE: loop exit
PB: predicated region body
PF: predicated region fallthrough
CT: control target
= control target key end

     0   :  { %8 = vsyncpa [#allocation3], 0  ;;  %s118_s12 = smov [#allocation2]   ;;  %s171_s0 = inlined_call_operand.vmem [shape: f32[16,32], index: 0, kind: input, shape index: {}]   ;;  %s172_s1 = inlined_call_operand.hbm [shape: f32[16,32], index: 1, kind: input, shape index: {}]   ;;  %s173_s2 = inlined_call_operand.vmem [shape: f32[16,1], index: 2, kind: input, shape index: {}]   ;;  %s174_s3 = inlined_call_operand.vmem [shape: f32[16,1], index: 3, kind: output, shape index: {}]  }
   0x1   :  { %s16_s13 = sshll.u32 %s118_s12, 4  ;;  %s94_s16 = scalar_lea.hbm %s172_s1, 256  ;;  %s17_s13 = int_to_ptr.vmem [resolvable:$true] %s16_s13 }
   0x2   :  { %p95_p0 = scmp.ne.s32.totalorder %s172_s1, %s94_s16  ;;  %p98_p1 = scmp.lt.u32.totalorder %s94_s16, %s172_s1 }
   0x4   :  { %p100_p2 = pnand %p98_p1, %p95_p0 }
   0x6   :  { %103 = shalt.err (!%p100_p2)
}
   0x7   :  { %s104_s21 = scalar_lea.vmem %s17_s13, 256  ;;  %p109_p4 = scmp.lt.s32.totalorder %s17_s13, %s17_s13 }
   0x8   :  { %p105_p3 = scmp.ne.s32.totalorder %s17_s13, %s104_s21  ;;  %p110_p5 = scmp.lt.s32.totalorder %s104_s21, %s104_s21 }
   0xa   :  { %p111_p6 = por %p110_p5, %p109_p4 }
   0xc   :  { %p112_p7 = pnand %p111_p6, %p105_p3 }
   0xe   :  { %115 = shalt.err (!%p112_p7)
}
   0xf   :  { %s119_s22 = smov 128   ;;  %s120_s23 = smov 8  }
  0x10   :  { %22 = dma.hbm_to_vmem [thread:$0]  %s172_s1, 256, %s17_s13, [#allocation3], %s119_s22, %s119_s22, %s120_s23  }
  0x11   :  { %116 = dma.done.wait [#allocation3], 256  }
  0x12   :  { %117 = vsyncadd [#allocation3], 4294967040  ;;  %v28_v0 = vld [vmem:[%s171_s0] sm:$0xff]  ;;  %v29_v2 = vld [vmem:[%s171_s0 + $0x8] sm:$0xff]  ;;  %vm36_vm0 = vcmask 261120   ;;  %vm79_vm5 = vcmask 7168  }
  0x13   :  { %v30_v1 = vld [vmem:[#allocation2] sm:$0xff]  ;;  %v31_v4 = vld [vmem:[#allocation2 + $0x8] sm:$0xff] }
  0x14   :  { %v32_v3 = vsub.f32 %v30_v1, %v28_v0  ;;  %v33_v5 = vsub.f32 %v31_v4, %v29_v2  ;;  %v45_v19 = vld [vmem:[%s173_s2] sm:$0xff]  ;;  %v46_v27 = vld [vmem:[%s173_s2 + $0x8] sm:$0xff] }
  0x15   :  { %v69_v21 = vsub.f32 1.0, %v45_v19  ;;  %v70_v30 = vsub.f32 1.0, %v46_v27 }
  0x16   :  { %v34_v6 = vmul.f32 %v32_v3, %v32_v3  ;;  %v35_v7 = vmul.f32 %v33_v5, %v33_v5 }
  0x18   :  { %v37_v8 = vsel %vm36_vm0, %v34_v6, 0.0  ;;  %v40_v9 = vsel %vm36_vm0, %v35_v7, 0.0 }
  0x19   :  { %38 = vadd.xlane.f32.xlu0 %v37_v8 }
  0x1d   :  { %41 = vadd.xlane.f32.xlu0 %v40_v9 }
  0xa6   :  { %v39_v10 = vpop.xlane.xlu0 %38 }
  0xa7   :  { %v47_v11 = vadd.f32 1e-09, %v39_v10  ;;  %v67_v32 = vmul.f32 %v45_v19, %v39_v10 }
  0xa9   :  { %90 = vrsqrt.f32 %v47_v11  ;;  %vm51_vm1 = vcmp.eq.f32.partialorder %v47_v11, inf  ;;  %v54_v16 = vand.u32 2147483648, %v47_v11  ;;  %vm53_vm2 = vcmp.eq.f32.partialorder %v47_v11, 0.0 }
  0xaa   :  { %v42_v12 = vpop.xlane.xlu0 %41 }
  0xab   :  { %v48_v13 = vadd.f32 1e-09, %v42_v12  ;;  %v68_v38 = vmul.f32 %v46_v27, %v42_v12 }
  0xad   :  { %92 = vrsqrt.f32 %v48_v13  ;;  %vm58_vm3 = vcmp.eq.f32.partialorder %v48_v13, inf  ;;  %v61_v24 = vand.u32 2147483648, %v48_v13  ;;  %vm60_vm4 = vcmp.eq.f32.partialorder %v48_v13, 0.0 }
  0xb3   :  { %v91_v14 = vpop.eup %90 }
  0xb4   :  { %v50_v15 = vmul.f32 %v91_v14, %v47_v11 }
  0xb6   :  { %v52_v17 = vsel %vm51_vm1, %v47_v11, %v50_v15 }
  0xb7   :  { %v93_v18 = vpop.eup %92  ;;  %v55_v20 = vsel %vm53_vm2, %v54_v16, %v52_v17 }
  0xb8   :  { %v63_v22 = vsub.f32 1.0, %v55_v20  ;;  %v57_v23 = vmul.f32 %v93_v18, %v48_v13 }
  0xba   :  { %v65_v25 = vmax.f32 %v63_v22, 0.0  ;;  %v59_v26 = vsel %vm58_vm3, %v48_v13, %v57_v23 }
  0xbb   :  { %v62_v28 = vsel %vm60_vm4, %v61_v24, %v59_v26 }
  0xbc   :  { %v71_v29 = vmul.f32 %v69_v21, %v65_v25  ;;  %v64_v31 = vsub.f32 1.0, %v62_v28 }
  0xbe   :  { %v73_v33 = vmul.f32 %v71_v29, %v65_v25  ;;  %v66_v34 = vmax.f32 %v64_v31, 0.0 }
  0xc0   :  { %v75_v35 = vadd.f32 %v73_v33, %v67_v32  ;;  %v72_v36 = vmul.f32 %v70_v30, %v66_v34 }
  0xc2   :  { %v77_v37 = vmul.f32 0.5, %v75_v35  ;;  %v74_v39 = vmul.f32 %v72_v36, %v66_v34 }
  0xc4   :  { %80 = vst.msk [vmem:[%s174_s3] sm:$0xff] %vm79_vm5, %v77_v37  ;;  %v76_v40 = vadd.f32 %v74_v39, %v68_v38 }
  0xc6   :  { %v78_v41 = vmul.f32 0.5, %v76_v40 }
  0xc8   :  { %81 = vst.msk [vmem:[%s174_s3 + $0x8] sm:$0xff] %vm79_vm5, %v78_v41 }
  0xc9   :  { %86 = vsyncpa [#allocation3], 1 }

</bundles_post_ra>
